<compile_context>
chip_gen: v6e
topology: v6e:2x2x1
jax: 0.10.0
libtpu: 0.0.40
codegen_flags: <defaults>
</compile_context>

<pallas_src>
import math

import numpy as np

import jax
import jax.numpy as jnp
from jax.experimental import pallas as pl
from jax.experimental.pallas import tpu as pltpu


def _build_pe_table(embedding_dim: int, max_seq_len: int = 200) -> jnp.ndarray:
    """Reproduce the (intentionally unusual) PyTorch PE formula exactly.

    pe[pos, i]   = sin(pos / 10000 ** (2 * i       / d))   for even i
    pe[pos, i+1] = cos(pos / 10000 ** (2 * (i + 1) / d))   (exponent uses i+1,
                                                            matching the reference)
    """
    assert embedding_dim % 2 == 0, "PositionalEncoder requires an even embedding_dim"
    pe = np.zeros((max_seq_len, embedding_dim), dtype=np.float32)
    for pos in range(max_seq_len):
        for i in range(0, embedding_dim, 2):
            pe[pos, i] = math.sin(pos / 10000 ** (2 * i / embedding_dim))
            pe[pos, i + 1] = math.cos(pos / 10000 ** (2 * (i + 1) / embedding_dim))
    return jnp.asarray(pe)  # (max_seq_len, embedding_dim), f32


def _pos_enc_kernel(scale: float):
    def kernel(x_ref, pe_ref, o_ref):
        # x_ref: (TB, TF) block; pe_ref: (1, TF) block (broadcasts over TB).
        # Compute in f32, cast on store (correct for bf16 inputs too).
        x = x_ref[...].astype(jnp.float32)
        o_ref[...] = (x * scale + pe_ref[...]).astype(o_ref.dtype)

    return kernel


_SINGLE_BLOCK_MAX_BYTES = 512 * 1024  # below this, one block / zero pipeline overhead


def _default_target_block_bytes(vmem_bytes: int) -> int:
    # ~4 live x-sized buffers (2x in + 2x out, double buffered) should stay
    # around a third of physical VMEM: v7x (64 MiB) -> ~5.3 MiB blocks,
    # v5e/v6e (128 MiB) -> capped at 8 MiB (vmem_limit_bytes is raised below).
    return max(2 << 20, min(8 << 20, vmem_bytes // 12))


def _choose_tiles(B: int, F: int, D: int, itemsize: int, target_bytes: int):
    """Pick a (TB, TF) block: TB multiple of 8 (or == B), TF multiple of 128
    (or == F).  Bounded by target_bytes for any shape; forces >= 2-4 grid steps
    for anything above the single-block fast path so the DMA pipeline (and
    v7x's two TensorCores) have work to overlap."""
    total = B * F * itemsize
    if total <= _SINGLE_BLOCK_MAX_BYTES:
        return B, F

    row_bytes = F * itemsize
    min_tb = B if B < 8 else 8

    if min_tb * row_bytes <= target_bytes:
        # Whole rows fit the budget: keep the lane axis full-F (lane-dense,
        # PE block fully resident) and tile the batch axis only.
        TF = F
        TB = max(min_tb, (target_bytes // row_bytes) // 8 * 8)
        if TB >= B:
            # One block would cover everything (> fast-path size): split so the
            # grid has roughly 2-4 steps.
            if B >= 16:
                TB = (((B + 3) // 4) + 7) // 8 * 8       # ~B/4, multiple of 8
            elif F >= 256:
                TB = B
                TF = (((F + 3) // 4) + 127) // 128 * 128  # ~F/4, multiple of 128
            else:
                TB = B  # tiny tensor; single block is fine
        return TB, TF

    # Even min_tb rows exceed the budget: tile the feature axis too, in
    # multiples of 128 lanes (and of D when that still fits the budget).
    TB = min_tb
    unit = 128
    lcm = 128 * D // math.gcd(128, D)
    if TB * lcm * itemsize <= target_bytes:
        unit = lcm
    TF = max(unit, (target_bytes // (TB * itemsize)) // unit * unit)
    return TB, TF


def positional_encoder(
    x: jnp.ndarray,
    pe_table: jnp.ndarray,
    *,
    target_block_bytes: int | None = None,
) -> jnp.ndarray:
    """x: (B, S, D), pe_table: (max_seq_len, D) float32. Returns x.dtype output."""
    B, S, D = x.shape
    max_seq_len, pe_d = pe_table.shape
    assert S <= max_seq_len, f"seq_len {S} exceeds max_seq_len {max_seq_len}"
    assert pe_d == D, "pe_table embedding_dim mismatch"

    try:
        vmem_bytes = int(pltpu.get_tpu_info().vmem_capacity_bytes)
    except Exception:
        vmem_bytes = 64 << 20  # conservative (v7x-sized) fallback
    if target_block_bytes is None:
        target_block_bytes = _default_target_block_bytes(vmem_bytes)

    F = S * D
    scale = float(math.sqrt(D))

    # Lane-dense 2-D views: last dim is the flattened feature axis.
    x2 = x.reshape(B, F)
    pe2 = pe_table[:S, :].reshape(1, F).astype(jnp.float32)

    itemsize = x.dtype.itemsize
    TB, TF = _choose_tiles(B, F, D, itemsize, target_block_bytes)
    nb = pl.cdiv(B, TB)
    nf = pl.cdiv(F, TF)

    # VMEM budget: 2x-in + 2x-out double buffers, single-buffered PE, slack.
    block_bytes = TB * TF * itemsize
    pe_block_bytes = TF * 4
    vmem_needed = 4 * block_bytes + 2 * pe_block_bytes + (2 << 20)
    vmem_limit = max(32 << 20, vmem_needed)
    vmem_limit = int(max(16 << 20, min(vmem_limit, vmem_bytes - (4 << 20))))

    def run(pe_pipeline_mode):
        pe_spec_kwargs = {}
        if pe_pipeline_mode is not None:
            pe_spec_kwargs = dict(pipeline_mode=pe_pipeline_mode)
        return pl.pallas_call(
            _pos_enc_kernel(scale),
            out_shape=jax.ShapeDtypeStruct((B, F), x.dtype),
            grid_spec=pltpu.PrefetchScalarGridSpec(
                num_scalar_prefetch=0,
                # Feature axis OUTER so the PE block is constant across the
                # inner batch loop (resident, single-buffered).
                grid=(nf, nb),
                in_specs=[
                    pl.BlockSpec((TB, TF), lambda j, i: (i, j)),
                    pl.BlockSpec((1, TF), lambda j, i: (0, j), **pe_spec_kwargs),
                ],
                out_specs=pl.BlockSpec((TB, TF), lambda j, i: (i, j)),
            ),
            compiler_params=pltpu.CompilerParams(
                dimension_semantics=("parallel", "parallel"),
                vmem_limit_bytes=vmem_limit,
            ),
        )(x2, pe2)

    try:
        # PE never changes within the inner axis -> no need for a double buffer.
        out2 = run(pl.Buffered(1))
    except Exception:
        out2 = run(None)

    return out2.reshape(B, S, D)


if __name__ == "__main__":
    # Small shapes consistent with the module: (batch, seq, embedding_dim)
    B, S, D = 2, 8, 32
    MAX_SEQ_LEN = 200

    key = jax.random.PRNGKey(0)
    x = jax.random.normal(key, (B, S, D), dtype=jnp.float32)

    pe_table = _build_pe_table(D, MAX_SEQ_LEN)

    out = jax.block_until_ready(positional_encoder(x, pe_table))

    # Reference check in plain JAX
    ref = x * math.sqrt(D) + pe_table[:S, :][None, :, :]
    assert out.shape == (B, S, D)
    assert jnp.allclose(out, ref, atol=1e-5, rtol=1e-5), "mismatch vs reference"

    print("KERNEL_OK")
</pallas_src>

<mosaic_0001>
module attributes {stable_mosaic.version = 11 : i64} {
  func.func @kernel(%arg0: i32, %arg1: i32, %arg2: memref<2x256xf32, #tpu.memory_space<vmem>>, %arg3: memref<1x256xf32, #tpu.memory_space<vmem>>, %arg4: memref<2x256xf32, #tpu.memory_space<vmem>>) attributes {dimension_semantics = [#tpu.dimension_semantics<parallel>, #tpu.dimension_semantics<parallel>], iteration_bounds = array<i64: 1, 1>, scalar_prefetch = 0 : i64, scratch_operands = 0 : i64, tpu.core_type = #tpu.core_type<tc>, window_params = [{transform_indices = @transform_0, window_bounds = array<i64: 2, 256>}, {pipeline_mode = #tpu.pipeline_mode<synchronous>, transform_indices = @transform_1, window_bounds = array<i64: 1, 256>}, {transform_indices = @transform_2, window_bounds = array<i64: 2, 256>}]} {
    %c0 = arith.constant 0 : index
    %c0_0 = arith.constant 0 : index
    %0 = vector.load %arg2[%c0, %c0_0] : memref<2x256xf32, #tpu.memory_space<vmem>>, vector<2x256xf32>
    %cst = arith.constant 5.65685415 : f32
    %1 = vector.broadcast %cst : f32 to vector<2x256xf32>
    %2 = arith.mulf %0, %1 : vector<2x256xf32>
    %c0_1 = arith.constant 0 : index
    %c0_2 = arith.constant 0 : index
    %3 = vector.load %arg3[%c0_1, %c0_2] : memref<1x256xf32, #tpu.memory_space<vmem>>, vector<1x256xf32>
    %4 = vector.broadcast %3 : vector<1x256xf32> to vector<2x256xf32>
    %5 = arith.addf %2, %4 : vector<2x256xf32>
    %c0_3 = arith.constant 0 : index
    %c0_4 = arith.constant 0 : index
    %6 = vector.load %arg4[%c0_3, %c0_4] : memref<2x256xf32, #tpu.memory_space<vmem>>, vector<2x256xf32>
    tpu.vector_store %arg4[%c0_3, %c0_4], %5 {strides = array<i32>} : memref<2x256xf32, #tpu.memory_space<vmem>>, vector<2x256xf32>,
    return
  }
  func.func @transform_0(%arg0: i32, %arg1: i32) -> (i32, i32) {
    %c0_i32 = arith.constant 0 : i32
    return %arg1, %arg0 : i32, i32
  }
  func.func @transform_1(%arg0: i32, %arg1: i32) -> (i32, i32) {
    %c0_i32 = arith.constant 0 : i32
    %c0_i32_0 = arith.constant 0 : i32
    return %c0_i32, %arg0 : i32, i32
  }
  func.func @transform_2(%arg0: i32, %arg1: i32) -> (i32, i32) {
    %c0_i32 = arith.constant 0 : i32
    return %arg1, %arg0 : i32, i32
  }
}

module attributes {stable_mosaic.version = 11 : i64} {
  func.func @kernel(%arg0: i32, %arg1: i32, %arg2: memref<2x256xf32, #tpu.memory_space<vmem>>, %arg3: memref<1x256xf32, #tpu.memory_space<vmem>>, %arg4: memref<2x256xf32, #tpu.memory_space<vmem>>) attributes {dimension_semantics = [#tpu.dimension_semantics<parallel>, #tpu.dimension_semantics<parallel>], iteration_bounds = array<i64: 1, 1>, scalar_prefetch = 0 : i64, scratch_operands = 0 : i64, tpu.core_type = #tpu.core_type<tc>, window_params = [{transform_indices = @transform_0, window_bounds = array<i64: 2, 256>}, {transform_indices = @transform_1, window_bounds = array<i64: 1, 256>}, {transform_indices = @transform_2, window_bounds = array<i64: 2, 256>}]} {
    %c0 = arith.constant 0 : index
    %c0_0 = arith.constant 0 : index
    %0 = vector.load %arg2[%c0, %c0_0] : memref<2x256xf32, #tpu.memory_space<vmem>>, vector<2x256xf32>
    %cst = arith.constant 5.65685415 : f32
    %1 = vector.broadcast %cst : f32 to vector<2x256xf32>
    %2 = arith.mulf %0, %1 : vector<2x256xf32>
    %c0_1 = arith.constant 0 : index
    %c0_2 = arith.constant 0 : index
    %3 = vector.load %arg3[%c0_1, %c0_2] : memref<1x256xf32, #tpu.memory_space<vmem>>, vector<1x256xf32>
    %4 = vector.broadcast %3 : vector<1x256xf32> to vector<2x256xf32>
    %5 = arith.addf %2, %4 : vector<2x256xf32>
    %c0_3 = arith.constant 0 : index
    %c0_4 = arith.constant 0 : index
    %6 = vector.load %arg4[%c0_3, %c0_4] : memref<2x256xf32, #tpu.memory_space<vmem>>, vector<2x256xf32>
    tpu.vector_store %arg4[%c0_3, %c0_4], %5 {strides = array<i32>} : memref<2x256xf32, #tpu.memory_space<vmem>>, vector<2x256xf32>,
    return
  }
  func.func @transform_0(%arg0: i32, %arg1: i32) -> (i32, i32) {
    %c0_i32 = arith.constant 0 : i32
    return %arg1, %arg0 : i32, i32
  }
  func.func @transform_1(%arg0: i32, %arg1: i32) -> (i32, i32) {
    %c0_i32 = arith.constant 0 : i32
    %c0_i32_0 = arith.constant 0 : i32
    return %c0_i32, %arg0 : i32, i32
  }
  func.func @transform_2(%arg0: i32, %arg1: i32) -> (i32, i32) {
    %c0_i32 = arith.constant 0 : i32
    return %arg1, %arg0 : i32, i32
  }
}

</mosaic_0001>

<bundles_post_ra>
// kernel: tpu_custom_call.1
= control target key start
LH: loop header
LB: loop body
LE: loop exit
PB: predicated region body
PF: predicated region fallthrough
CT: control target
= control target key end

     0   :  { %7 = vsyncpa [#allocation3], 0  ;;  %s173_s0 = inlined_call_operand.hbm [shape: f32[2,256], index: 0, kind: input, shape index: {}]   ;;  %s174_s1 = inlined_call_operand.hbm [shape: f32[1,256], index: 1, kind: input, shape index: {}]   ;;  %s175_s2 = inlined_call_operand.hbm [shape: f32[2,256], index: 2, kind: output, shape index: {}]  }
   0x1   :  { %8 = vsyncpa [#allocation6], 0 }
   0x2   :  { %9 = vsyncpa [#allocation4], 0  ;;  %s145_s9 = smov [#allocation2]   ;;  %s146_s11 = smov [#allocation5]  }
   0x3   :  { %s16_s10 = sshll.u32 %s145_s9, 4  ;;  %s26_s12 = sshll.u32 %s146_s11, 4  ;;  %s17_s10 = int_to_ptr.vmem [resolvable:$true] %s16_s10  ;;  %s27_s12 = int_to_ptr.vmem [resolvable:$true] %s26_s12 }
   0x4   :  { %s87_s13 = scalar_lea.vmem %s17_s10, 64  ;;  %p92_p1 = scmp.lt.s32.totalorder %s17_s10, %s17_s10 }
   0x5   :  { %p88_p0 = scmp.ne.s32.totalorder %s17_s10, %s87_s13  ;;  %p93_p2 = scmp.lt.s32.totalorder %s87_s13, %s87_s13 }
   0x7   :  { %p94_p3 = por %p93_p2, %p92_p1 }
   0x9   :  { %p95_p4 = pnand %p94_p3, %p88_p0 }
   0xb   :  { %98 = shalt.err (!%p95_p4)
}
   0xc   :  { %19 = dma.hbm_to_vmem [thread:$0]  %s173_s0, 64, %s17_s10, [#allocation3]  }
   0xd   :  { %s107_s16 = scalar_lea.vmem %s27_s12, 32  ;;  %p112_p6 = scmp.lt.s32.totalorder %s27_s12, %s27_s12 }
   0xe   :  { %p108_p5 = scmp.ne.s32.totalorder %s27_s12, %s107_s16  ;;  %p113_p7 = scmp.lt.s32.totalorder %s107_s16, %s107_s16 }
  0x10   :  { %p114_p8 = por %p113_p7, %p112_p6 }
  0x12   :  { %p115_p9 = pnand %p114_p8, %p108_p5 }
  0x14   :  { %118 = shalt.err (!%p115_p9)
}
  0x15   :  { %29 = dma.hbm_to_vmem [thread:$0]  %s174_s1, 32, %s27_s12, [#allocation6]  }
  0x16   :  { %139 = dma.done.wait [#allocation3], 64  }
  0x17   :  { %140 = vsyncadd [#allocation3], 4294967232 }
  0x18   :  { %141 = dma.done.wait [#allocation6], 32  }
  0x19   :  { %142 = vsyncadd [#allocation6], 4294967264  ;;  %v40_v0 = vlaneseq  ;;  %v147_v1 = vmov 1983009808   ;;  %v36_v7 = vld [vmem:[#allocation2] sm:$0xf] }
  0x1a   :  { %v50_v2 = vunpack.c.l.s4 %v147_v1  ;;  %v38_v8 = vld [vmem:[#allocation5] sm:$0x3]  ;;  %v37_v12 = vmul.f32 5.656854, %v36_v7  ;;  %s148_s0 = smov [#allocation7]  }
  0x1b   :  { %v41_v3 = vshrl.u32 %v40_v0, 7  ;;  %s65_s1 = sshll.u32 %s148_s0, 4  ;;  %s66_s1 = int_to_ptr.vmem [resolvable:$true] %s65_s1 }
  0x1c   :  { %v51_v6 = vunpack.c.0.s8 %v50_v2  ;;  %s119_s19 = scalar_lea.vmem %s66_s1, 64  ;;  %p124_p11 = scmp.lt.s32.totalorder %s66_s1, %s66_s1 }
  0x1d   :  { %v42_v4 = vsub.s32 0, %v41_v3  ;;  %v46_v5 = vsub.s32 1, %v41_v3  ;;  %p120_p10 = scmp.ne.s32.totalorder %s66_s1, %s119_s19  ;;  %p125_p12 = scmp.lt.s32.totalorder %s119_s19, %s119_s19 }
  0x1e   :  { %v54_v11 = vsub.s32 %v51_v6, %v41_v3 }
  0x1f   :  { %v43_v9 = vrot.slane %v38_v8, %v42_v4  ;;  %v47_v10 = vrot.slane %v38_v8, %v46_v5  ;;  %p126_p13 = por %p125_p12, %p124_p11 }
  0x21   :  { %v48_v13 = vcombine.low %v43_v9, %v47_v10  ;;  %p127_p0 = pnand %p126_p13, %p120_p10 }
  0x23   :  { %v55_v14 = vrot.slane %v48_v13, %v54_v11 }
  0x25   :  { %v57_v15 = vadd.f32 %v55_v14, %v37_v12 }
  0x27   :  { %58 = vst [vmem:[#allocation7] sm:$0xf] %v57_v15 }
  0x28   :  { %130 = shalt.err (!%p127_p0)
}
  0x29   :  { %68 = dma.vmem_to_hbm [thread:$0]  %s66_s1, 64, %s175_s2, [#allocation4]  }
  0x2a   :  { %143 = dma.done.wait [#allocation4], 64  }
  0x2b   :  { %144 = vsyncadd [#allocation4], 4294967232 }
  0x2c   :  { %72 = vsyncpa [#allocation3], 1 }
  0x2d   :  { %73 = vsyncpa [#allocation6], 1 }
  0x2e   :  { %74 = vsyncpa [#allocation4], 1 }

// kernel: tpu_custom_call.1
= control target key start
LH: loop header
LB: loop body
LE: loop exit
PB: predicated region body
PF: predicated region fallthrough
CT: control target
= control target key end

     0   :  { %7 = vsyncpa [#allocation3], 0  ;;  %s173_s0 = inlined_call_operand.hbm [shape: f32[2,256], index: 0, kind: input, shape index: {}]   ;;  %s174_s1 = inlined_call_operand.hbm [shape: f32[1,256], index: 1, kind: input, shape index: {}]   ;;  %s175_s2 = inlined_call_operand.hbm [shape: f32[2,256], index: 2, kind: output, shape index: {}]  }
   0x1   :  { %8 = vsyncpa [#allocation6], 0 }
   0x2   :  { %9 = vsyncpa [#allocation4], 0  ;;  %s145_s9 = smov [#allocation2]   ;;  %s146_s11 = smov [#allocation5]  }
   0x3   :  { %s16_s10 = sshll.u32 %s145_s9, 4  ;;  %s26_s12 = sshll.u32 %s146_s11, 4  ;;  %s17_s10 = int_to_ptr.vmem [resolvable:$true] %s16_s10  ;;  %s27_s12 = int_to_ptr.vmem [resolvable:$true] %s26_s12 }
   0x4   :  { %s87_s13 = scalar_lea.vmem %s17_s10, 64  ;;  %p92_p1 = scmp.lt.s32.totalorder %s17_s10, %s17_s10 }
   0x5   :  { %p88_p0 = scmp.ne.s32.totalorder %s17_s10, %s87_s13  ;;  %p93_p2 = scmp.lt.s32.totalorder %s87_s13, %s87_s13 }
   0x7   :  { %p94_p3 = por %p93_p2, %p92_p1 }
   0x9   :  { %p95_p4 = pnand %p94_p3, %p88_p0 }
   0xb   :  { %98 = shalt.err (!%p95_p4)
}
   0xc   :  { %19 = dma.hbm_to_vmem [thread:$0]  %s173_s0, 64, %s17_s10, [#allocation3]  }
   0xd   :  { %s107_s16 = scalar_lea.vmem %s27_s12, 32  ;;  %p112_p6 = scmp.lt.s32.totalorder %s27_s12, %s27_s12 }
   0xe   :  { %p108_p5 = scmp.ne.s32.totalorder %s27_s12, %s107_s16  ;;  %p113_p7 = scmp.lt.s32.totalorder %s107_s16, %s107_s16 }
  0x10   :  { %p114_p8 = por %p113_p7, %p112_p6 }
  0x12   :  { %p115_p9 = pnand %p114_p8, %p108_p5 }
  0x14   :  { %118 = shalt.err (!%p115_p9)
}
  0x15   :  { %29 = dma.hbm_to_vmem [thread:$0]  %s174_s1, 32, %s27_s12, [#allocation6]  }
  0x16   :  { %139 = dma.done.wait [#allocation3], 64  }
  0x17   :  { %140 = vsyncadd [#allocation3], 4294967232 }
  0x18   :  { %141 = dma.done.wait [#allocation6], 32  }
  0x19   :  { %142 = vsyncadd [#allocation6], 4294967264  ;;  %v40_v0 = vlaneseq  ;;  %v147_v1 = vmov 1983009808   ;;  %v36_v7 = vld [vmem:[#allocation2] sm:$0xf] }
  0x1a   :  { %v50_v2 = vunpack.c.l.s4 %v147_v1  ;;  %v38_v8 = vld [vmem:[#allocation5] sm:$0x3]  ;;  %v37_v12 = vmul.f32 5.656854, %v36_v7  ;;  %s148_s0 = smov [#allocation7]  }
  0x1b   :  { %v41_v3 = vshrl.u32 %v40_v0, 7  ;;  %s65_s1 = sshll.u32 %s148_s0, 4  ;;  %s66_s1 = int_to_ptr.vmem [resolvable:$true] %s65_s1 }
  0x1c   :  { %v51_v6 = vunpack.c.0.s8 %v50_v2  ;;  %s119_s19 = scalar_lea.vmem %s66_s1, 64  ;;  %p124_p11 = scmp.lt.s32.totalorder %s66_s1, %s66_s1 }
  0x1d   :  { %v42_v4 = vsub.s32 0, %v41_v3  ;;  %v46_v5 = vsub.s32 1, %v41_v3  ;;  %p120_p10 = scmp.ne.s32.totalorder %s66_s1, %s119_s19  ;;  %p125_p12 = scmp.lt.s32.totalorder %s119_s19, %s119_s19 }
  0x1e   :  { %v54_v11 = vsub.s32 %v51_v6, %v41_v3 }
  0x1f   :  { %v43_v9 = vrot.slane %v38_v8, %v42_v4  ;;  %v47_v10 = vrot.slane %v38_v8, %v46_v5  ;;  %p126_p13 = por %p125_p12, %p124_p11 }
  0x21   :  { %v48_v13 = vcombine.low %v43_v9, %v47_v10  ;;  %p127_p0 = pnand %p126_p13, %p120_p10 }
  0x23   :  { %v55_v14 = vrot.slane %v48_v13, %v54_v11 }
  0x25   :  { %v57_v15 = vadd.f32 %v55_v14, %v37_v12 }
  0x27   :  { %58 = vst [vmem:[#allocation7] sm:$0xf] %v57_v15 }
  0x28   :  { %130 = shalt.err (!%p127_p0)
}
  0x29   :  { %68 = dma.vmem_to_hbm [thread:$0]  %s66_s1, 64, %s175_s2, [#allocation4]  }
  0x2a   :  { %143 = dma.done.wait [#allocation4], 64  }
  0x2b   :  { %144 = vsyncadd [#allocation4], 4294967232 }
  0x2c   :  { %72 = vsyncpa [#allocation3], 1 }
  0x2d   :  { %73 = vsyncpa [#allocation6], 1 }
  0x2e   :  { %74 = vsyncpa [#allocation4], 1 }

</bundles_post_ra>
